<compile_context>
chip_gen: v7x
topology: tpu7x:2x2x1
jax: 0.10.0
libtpu: 0.0.40
codegen_flags: <defaults>
</compile_context>

<pallas_src>
import math
from functools import partial

import jax
import jax.numpy as jnp
from jax import lax
from jax.scipy.special import erf
from jax.experimental import pallas as pl
from jax.experimental.pallas import tpu as pltpu

LN_EPS = 1e-5  # torch.nn.LayerNorm default


def _gelu_exact(x):
    # nn.GELU() default (approximate='none'): 0.5 * x * (1 + erf(x / sqrt(2)))
    return 0.5 * x * (1.0 + erf(x * (1.0 / math.sqrt(2.0))))


def _layernorm(v, gamma, beta):
    mu = jnp.mean(v, axis=-1, keepdims=True)
    var = jnp.mean(jnp.square(v - mu), axis=-1, keepdims=True)
    return (v - mu) * lax.rsqrt(var + LN_EPS) * gamma + beta


# ---------------------------------------------------------------------------
# Pallas kernels
# ---------------------------------------------------------------------------
def _embed_kernel(p_ref, w_ref, b_ref, o_ref):
    # patches tile (TM, K) bf16 @ W (K, C) bf16 -> f32, + b (1, C)
    o_ref[...] = (
        jnp.dot(p_ref[...], w_ref[...], preferred_element_type=jnp.float32)
        + b_ref[...]
    )


def _fused_mixer_blocks_kernel(
    x_ref, g_ref, be_ref,
    wt1_ref, bt1_ref, wt2_ref, bt2_ref,
    wc1_ref, bc1_ref, wc2_ref, bc2_ref,
    o_ref,
):
    # grid = (batch n, block b).  Output block index is constant across b, so
    # o_ref stays resident in VMEM for all blocks of one batch item.
    blk = pl.program_id(1)

    @pl.when(blk == 0)
    def _():
        o_ref[0] = x_ref[0]          # seed the resident activation from input

    x = o_ref[0]                     # (T, C) f32, resident across the block axis
    gamma = g_ref[0]                 # (1, C)
    beta = be_ref[0]                 # (1, C)

    # ---- token mixing (left-multiplication form, no activation transposes) --
    #   torch: z = fc2(gelu(fc1(LN(x)^T)))^T
    #   here:  h = gelu(W1 @ LN(x) + b1[:, None]) ; z = W2 @ h + b2[:, None]
    y = _layernorm(x, gamma, beta)                                   # (T, C) f32
    h = _gelu_exact(
        jnp.dot(wt1_ref[0], y.astype(jnp.bfloat16),
                preferred_element_type=jnp.float32)
        + bt1_ref[0]
    )                                                                # (Ht, C) f32
    z = (
        jnp.dot(wt2_ref[0], h.astype(jnp.bfloat16),
                preferred_element_type=jnp.float32)
        + bt2_ref[0]
    )                                                                # (Ht, C)
    x = x + z                        # residual (requires Ht == T, as in module)

    # ---- channel mixing (same LayerNorm params, as in the PyTorch block) ----
    y2 = _layernorm(x, gamma, beta)                                  # (T, C)
    hc = _gelu_exact(
        jnp.dot(y2.astype(jnp.bfloat16), wc1_ref[0],
                preferred_element_type=jnp.float32)
        + bc1_ref[0]
    )                                                                # (T, Hc)
    zc = (
        jnp.dot(hc.astype(jnp.bfloat16), wc2_ref[0],
                preferred_element_type=jnp.float32)
        + bc2_ref[0]
    )                                                                # (T, Hc)
    o_ref[0] = x + zc                # residual (requires Hc == C)


def _head_kernel(x_ref, g_ref, be_ref, wf_ref, bf_ref, o_ref):
    y = _layernorm(x_ref[...], g_ref[...], be_ref[...])   # (TN, T, C) f32
    pooled = jnp.mean(y, axis=1)                          # (TN, C) mean over tokens
    o_ref[...] = (
        jnp.dot(pooled, wf_ref[...], preferred_element_type=jnp.float32)
        + bf_ref[...]
    )


# ---------------------------------------------------------------------------
# Forward (wrapper / glue)
# ---------------------------------------------------------------------------
def mlp_mixer_forward(x, params, *, patch_size, tokens_mlp_dim):
    N, Cin, D, H, W = x.shape
    p = patch_size
    Dp, Hp, Wp = D // p, H // p, W // p
    T = Dp * Hp * Wp
    if T != tokens_mlp_dim:
        raise ValueError(f"tokens_mlp_dim={tokens_mlp_dim}, y.shape[1]={T}.")
    K = Cin * p * p * p

    # ---- patch extraction glue: (N, Cin, D, H, W) -> (N*T, K) ---------------
    patches = x.reshape(N, Cin, Dp, p, Hp, p, Wp, p)
    patches = patches.transpose(0, 2, 4, 6, 1, 3, 5, 7).reshape(N * T, K)
    patches = patches.astype(jnp.bfloat16)

    we = params["embed_w"]                               # (C, Cin, p, p, p) torch layout
    C = we.shape[0]
    we2 = we.reshape(C, K).T.astype(jnp.bfloat16)        # (K, C)
    be = params["embed_b"].reshape(1, C).astype(jnp.float32)

    # ---- tiled patch-embed matmul -------------------------------------------
    NT = N * T
    TM = NT if NT <= 512 else 512                        # 512 % 8 == 0; full block if small
    y = pl.pallas_call(
        _embed_kernel,
        out_shape=jax.ShapeDtypeStruct((NT, C), jnp.float32),
        grid=(pl.cdiv(NT, TM),),
        in_specs=[
            pl.BlockSpec((TM, K), lambda i: (i, 0)),     # patches row tile
            pl.BlockSpec((K, C), lambda i: (0, 0)),      # embed weight (full)
            pl.BlockSpec((1, C), lambda i: (0, 0)),      # embed bias
        ],
        out_specs=pl.BlockSpec((TM, C), lambda i: (i, 0)),
        compiler_params=pltpu.CompilerParams(dimension_semantics=("parallel",)),
    )(patches, we2, be)
    y = y.reshape(N, T, C)                               # (N, tokens, channels)

    # ---- all mixer blocks fused into one pallas_call ------------------------
    blocks = params["blocks"]
    L = len(blocks)
    Ht = blocks[0]["wt1"].shape[0]
    Hc = blocks[0]["wc1"].shape[0]
    assert Ht == T, f"residual add requires tokens_hidden_dim == tokens ({Ht} vs {T})"
    assert Hc == C, f"residual add requires channels_hidden_dim == channels ({Hc} vs {C})"

    def stack(key):
        return jnp.stack([b[key] for b in blocks])

    gamma = stack("gamma").reshape(L, 1, C).astype(jnp.float32)
    beta = stack("beta").reshape(L, 1, C).astype(jnp.float32)
    wt1 = stack("wt1").astype(jnp.bfloat16)                       # (L, Ht, T)  un-transposed
    bt1 = stack("bt1").reshape(L, Ht, 1).astype(jnp.float32)      # column bias
    wt2 = stack("wt2").astype(jnp.bfloat16)                       # (L, Ht, Ht) un-transposed
    bt2 = stack("bt2").reshape(L, Ht, 1).astype(jnp.float32)
    wc1 = jnp.swapaxes(stack("wc1"), 1, 2).astype(jnp.bfloat16)   # (L, C, Hc)  = W^T
    bc1 = stack("bc1").reshape(L, 1, Hc).astype(jnp.float32)
    wc2 = jnp.swapaxes(stack("wc2"), 1, 2).astype(jnp.bfloat16)   # (L, Hc, Hc) = W^T
    bc2 = stack("bc2").reshape(L, 1, Hc).astype(jnp.float32)

    y = pl.pallas_call(
        _fused_mixer_blocks_kernel,
        out_shape=jax.ShapeDtypeStruct((N, T, C), jnp.float32),
        grid=(N, L),
        in_specs=[
            pl.BlockSpec((1, T, C), lambda n, b: (n, 0, 0)),      # activation (resident)
            pl.BlockSpec((1, 1, C), lambda n, b: (b, 0, 0)),      # ln gamma
            pl.BlockSpec((1, 1, C), lambda n, b: (b, 0, 0)),      # ln beta
            pl.BlockSpec((1, Ht, T), lambda n, b: (b, 0, 0)),     # tokens fc1 W
            pl.BlockSpec((1, Ht, 1), lambda n, b: (b, 0, 0)),     # tokens fc1 b (col)
            pl.BlockSpec((1, Ht, Ht), lambda n, b: (b, 0, 0)),    # tokens fc2 W
            pl.BlockSpec((1, Ht, 1), lambda n, b: (b, 0, 0)),     # tokens fc2 b (col)
            pl.BlockSpec((1, C, Hc), lambda n, b: (b, 0, 0)),     # channels fc1 W^T
            pl.BlockSpec((1, 1, Hc), lambda n, b: (b, 0, 0)),     # channels fc1 b
            pl.BlockSpec((1, Hc, Hc), lambda n, b: (b, 0, 0)),    # channels fc2 W^T
            pl.BlockSpec((1, 1, Hc), lambda n, b: (b, 0, 0)),     # channels fc2 b
        ],
        out_specs=pl.BlockSpec((1, T, C), lambda n, b: (n, 0, 0)),
        input_output_aliases={0: 0},                              # in-place activation update
        compiler_params=pltpu.CompilerParams(
            dimension_semantics=("parallel", "arbitrary")),
    )(y, gamma, beta, wt1, bt1, wt2, bt2, wc1, bc1, wc2, bc2)

    # ---- head: LayerNorm + mean over tokens + fc (tiled over batch) ---------
    # dropout_p == 0.0 -> identity (skipped, same as the PyTorch forward)
    num_classes = params["fc_w"].shape[0]
    TN = N if N <= 8 else 8
    out = pl.pallas_call(
        _head_kernel,
        out_shape=jax.ShapeDtypeStruct((N, num_classes), jnp.float32),
        grid=(pl.cdiv(N, TN),),
        in_specs=[
            pl.BlockSpec((TN, T, C), lambda i: (i, 0, 0)),
            pl.BlockSpec((1, C), lambda i: (0, 0)),
            pl.BlockSpec((1, C), lambda i: (0, 0)),
            pl.BlockSpec((C, num_classes), lambda i: (0, 0)),
            pl.BlockSpec((1, num_classes), lambda i: (0, 0)),
        ],
        out_specs=pl.BlockSpec((TN, num_classes), lambda i: (i, 0)),
        compiler_params=pltpu.CompilerParams(dimension_semantics=("parallel",)),
    )(
        y,
        params["norm_gamma"].reshape(1, C).astype(jnp.float32),
        params["norm_beta"].reshape(1, C).astype(jnp.float32),
        params["fc_w"].T.astype(jnp.float32),
        params["fc_b"].reshape(1, num_classes).astype(jnp.float32),
    )
    return out


# ---------------------------------------------------------------------------
# Pure-JAX f32 reference (mirrors the PyTorch forward) for a sanity check
# ---------------------------------------------------------------------------
def reference_forward(x, params, *, patch_size, tokens_mlp_dim):
    N, Cin, D, H, W = x.shape
    p = patch_size
    Dp, Hp, Wp = D // p, H // p, W // p
    T = Dp * Hp * Wp
    patches = (
        x.reshape(N, Cin, Dp, p, Hp, p, Wp, p)
        .transpose(0, 2, 4, 6, 1, 3, 5, 7)
        .reshape(N, T, Cin * p * p * p)
    )
    C = params["embed_w"].shape[0]
    we = params["embed_w"].reshape(C, -1)
    y = jnp.einsum("ntk,ck->ntc", patches, we) + params["embed_b"]

    for blk in params["blocks"]:
        z = _layernorm(y, blk["gamma"], blk["beta"])
        z = jnp.swapaxes(z, 1, 2)
        z = _gelu_exact(z @ blk["wt1"].T + blk["bt1"]) @ blk["wt2"].T + blk["bt2"]
        y = y + jnp.swapaxes(z, 1, 2)
        z = _layernorm(y, blk["gamma"], blk["beta"])
        y = y + (_gelu_exact(z @ blk["wc1"].T + blk["bc1"]) @ blk["wc2"].T + blk["bc2"])

    y = _layernorm(y, params["norm_gamma"], params["norm_beta"])
    y = jnp.mean(y, axis=1)
    return y @ params["fc_w"].T + params["fc_b"]


# ---------------------------------------------------------------------------
# Deterministic parameter init (shapes per MlpMixer.__init__, torch layouts)
# ---------------------------------------------------------------------------
def init_params(key, *, in_dim, num_classes, num_blocks, patch_size,
                tokens_hidden_dim, channels_hidden_dim,
                tokens_mlp_dim, channels_mlp_dim):
    C, T, Ht, Hc = channels_mlp_dim, tokens_mlp_dim, tokens_hidden_dim, channels_hidden_dim
    keys = iter(jax.random.split(key, 6 + 10 * num_blocks))

    def nrm(shape, scale=0.05):
        return scale * jax.random.normal(next(keys), shape, dtype=jnp.float32)

    blocks = []
    for _ in range(num_blocks):
        blocks.append(dict(
            gamma=1.0 + nrm((C,)), beta=nrm((C,)),
            wt1=nrm((Ht, T)), bt1=nrm((Ht,)),
            wt2=nrm((Ht, Ht)), bt2=nrm((Ht,)),
            wc1=nrm((Hc, C)), bc1=nrm((Hc,)),
            wc2=nrm((Hc, Hc)), bc2=nrm((Hc,)),
        ))
    return dict(
        embed_w=nrm((C, in_dim, patch_size, patch_size, patch_size)),
        embed_b=nrm((C,)),
        blocks=blocks,
        norm_gamma=1.0 + nrm((C,)),
        norm_beta=nrm((C,)),
        fc_w=nrm((num_classes, C)),
        fc_b=nrm((num_classes,)),
    )


if __name__ == "__main__":
    # Small config consistent with the module's constraints:
    #   tokens = (D/p)*(H/p)*(W/p) must equal tokens_mlp_dim, and the residual
    #   adds require tokens_hidden_dim == tokens_mlp_dim and
    #   channels_hidden_dim == channels_mlp_dim (true for the 300/300 default).
    # TODO(synk): for the real 300/300 config, padding T/C/Ht/Hc to multiples of
    #             128 (e.g. 384) would avoid masked partial stores / wasted lanes.
    N, Cin = 2, 1
    patch = 4
    D = H = W = 8
    T = (D // patch) * (H // patch) * (W // patch)      # 8 tokens
    C = 32                                              # channels_mlp_dim
    num_blocks = 2
    num_classes = 3

    key = jax.random.PRNGKey(0)
    kx, kp = jax.random.split(key)
    x = jax.random.normal(kx, (N, Cin, D, H, W), dtype=jnp.float32)
    params = init_params(
        kp, in_dim=Cin, num_classes=num_classes, num_blocks=num_blocks,
        patch_size=patch, tokens_hidden_dim=T, channels_hidden_dim=C,
        tokens_mlp_dim=T, channels_mlp_dim=C,
    )

    fwd = jax.jit(partial(mlp_mixer_forward, patch_size=patch, tokens_mlp_dim=T))
    out = fwd(x, params)
    out = jax.block_until_ready(out)

    ref = reference_forward(x, params, patch_size=patch, tokens_mlp_dim=T)
    assert out.shape == (N, num_classes)
    # Matmul operands are bf16 (f32 accumulation), so tolerance vs the pure-f32
    # reference is relaxed accordingly.
    assert jnp.allclose(out, ref, atol=3e-2, rtol=3e-2), (out, ref)

    print("KERNEL_OK")
</pallas_src>

<mosaic_0001>
module attributes {stable_mosaic.version = 11 : i64} {
  func.func @_embed_kernel(%arg0: i32, %arg1: memref<16x64xbf16, #tpu.memory_space<vmem>>, %arg2: memref<64x32xbf16, #tpu.memory_space<vmem>>, %arg3: memref<1x32xf32, #tpu.memory_space<vmem>>, %arg4: memref<16x32xf32, #tpu.memory_space<vmem>>) attributes {dimension_semantics = [#tpu.dimension_semantics<parallel>], iteration_bounds = array<i64: 1>, scalar_prefetch = 0 : i64, scratch_operands = 0 : i64, tpu.core_type = #tpu.core_type<tc>, window_params = [{transform_indices = @transform_0, window_bounds = array<i64: 16, 64>}, {pipeline_mode = #tpu.pipeline_mode<synchronous>, transform_indices = @transform_1, window_bounds = array<i64: 64, 32>}, {pipeline_mode = #tpu.pipeline_mode<synchronous>, transform_indices = @transform_2, window_bounds = array<i64: 1, 32>}, {transform_indices = @transform_3, window_bounds = array<i64: 16, 32>}]} {
    %c0 = arith.constant 0 : index
    %c0_0 = arith.constant 0 : index
    %0 = vector.load %arg1[%c0, %c0_0] : memref<16x64xbf16, #tpu.memory_space<vmem>>, vector<16x64xbf16>
    %c0_1 = arith.constant 0 : index
    %c0_2 = arith.constant 0 : index
    %1 = vector.load %arg2[%c0_1, %c0_2] : memref<64x32xbf16, #tpu.memory_space<vmem>>, vector<64x32xbf16>
    %cst = arith.constant dense<0.000000e+00> : vector<16x32xf32>
    %2 = tpu.matmul %0, %1, %cst {dimension_numbers = #tpu.dot_dimension_numbers<[1], [0], [0], [1], [0, 0, 1, 1], [], []>} : vector<16x64xbf16>, vector<64x32xbf16>, vector<16x32xf32> -> vector<16x32xf32>
    %c0_3 = arith.constant 0 : index
    %c0_4 = arith.constant 0 : index
    %3 = vector.load %arg3[%c0_3, %c0_4] : memref<1x32xf32, #tpu.memory_space<vmem>>, vector<1x32xf32>
    %4 = vector.broadcast %3 : vector<1x32xf32> to vector<16x32xf32>
    %5 = arith.addf %2, %4 : vector<16x32xf32>
    %c0_5 = arith.constant 0 : index
    %c0_6 = arith.constant 0 : index
    %6 = vector.load %arg4[%c0_5, %c0_6] : memref<16x32xf32, #tpu.memory_space<vmem>>, vector<16x32xf32>
    tpu.vector_store %arg4[%c0_5, %c0_6], %5 {strides = array<i32>} : memref<16x32xf32, #tpu.memory_space<vmem>>, vector<16x32xf32>,
    return
  }
  func.func @transform_0(%arg0: i32) -> (i32, i32) {
    %c0_i32 = arith.constant 0 : i32
    %c0_i32_0 = arith.constant 0 : i32
    return %arg0, %c0_i32 : i32, i32
  }
  func.func @transform_1(%arg0: i32) -> (i32, i32) {
    %c0_i32 = arith.constant 0 : i32
    %c0_i32_0 = arith.constant 0 : i32
    %c0_i32_1 = arith.constant 0 : i32
    return %c0_i32, %c0_i32_0 : i32, i32
  }
  func.func @transform_2(%arg0: i32) -> (i32, i32) {
    %c0_i32 = arith.constant 0 : i32
    %c0_i32_0 = arith.constant 0 : i32
    %c0_i32_1 = arith.constant 0 : i32
    return %c0_i32, %c0_i32_0 : i32, i32
  }
  func.func @transform_3(%arg0: i32) -> (i32, i32) {
    %c0_i32 = arith.constant 0 : i32
    %c0_i32_0 = arith.constant 0 : i32
    return %arg0, %c0_i32 : i32, i32
  }
}

module attributes {stable_mosaic.version = 11 : i64} {
  func.func @_fused_mixer_blocks_kernel(%arg0: i32, %arg1: i32, %arg2: memref<1x8x32xf32, #tpu.memory_space<vmem>>, %arg3: memref<1x1x32xf32, #tpu.memory_space<vmem>>, %arg4: memref<1x1x32xf32, #tpu.memory_space<vmem>>, %arg5: memref<1x8x8xbf16, #tpu.memory_space<vmem>>, %arg6: memref<1x8x1xf32, #tpu.memory_space<vmem>>, %arg7: memref<1x8x8xbf16, #tpu.memory_space<vmem>>, %arg8: memref<1x8x1xf32, #tpu.memory_space<vmem>>, %arg9: memref<1x32x32xbf16, #tpu.memory_space<vmem>>, %arg10: memref<1x1x32xf32, #tpu.memory_space<vmem>>, %arg11: memref<1x32x32xbf16, #tpu.memory_space<vmem>>, %arg12: memref<1x1x32xf32, #tpu.memory_space<vmem>>, %arg13: memref<1x8x32xf32, #tpu.memory_space<vmem>>) attributes {dimension_semantics = [#tpu.dimension_semantics<parallel>, #tpu.dimension_semantics<arbitrary>], iteration_bounds = array<i64: 2, 2>, scalar_prefetch = 0 : i64, scratch_operands = 0 : i64, tpu.core_type = #tpu.core_type<tc>, window_params = [{transform_indices = @transform_0, window_bounds = array<i64: 1, 8, 32>}, {transform_indices = @transform_1, window_bounds = array<i64: 1, 1, 32>}, {transform_indices = @transform_2, window_bounds = array<i64: 1, 1, 32>}, {transform_indices = @transform_3, window_bounds = array<i64: 1, 8, 8>}, {transform_indices = @transform_4, window_bounds = array<i64: 1, 8, 1>}, {transform_indices = @transform_5, window_bounds = array<i64: 1, 8, 8>}, {transform_indices = @transform_6, window_bounds = array<i64: 1, 8, 1>}, {transform_indices = @transform_7, window_bounds = array<i64: 1, 32, 32>}, {transform_indices = @transform_8, window_bounds = array<i64: 1, 1, 32>}, {transform_indices = @transform_9, window_bounds = array<i64: 1, 32, 32>}, {transform_indices = @transform_10, window_bounds = array<i64: 1, 1, 32>}, {transform_indices = @transform_11, window_bounds = array<i64: 1, 8, 32>}]} {
    %c0_i32 = arith.constant 0 : i32
    %0 = arith.cmpi eq, %arg1, %c0_i32 : i32
    %1 = arith.extui %0 : i1 to i32
    %c0_i32_0 = arith.constant 0 : i32
    %2 = arith.cmpi ne, %1, %c0_i32_0 : i32
    scf.if %2 {
      %c0_55 = arith.constant 0 : index
      %c0_56 = arith.constant 0 : index
      %c0_57 = arith.constant 0 : index
      %106 = vector.load %arg2[%c0_55, %c0_56, %c0_57] : memref<1x8x32xf32, #tpu.memory_space<vmem>>, vector<1x8x32xf32>
      %107 = vector.shape_cast %106 : vector<1x8x32xf32> to vector<8x32xf32>
      %c0_58 = arith.constant 0 : index
      %c0_59 = arith.constant 0 : index
      %c0_60 = arith.constant 0 : index
      %108 = vector.load %arg13[%c0_58, %c0_59, %c0_60] : memref<1x8x32xf32, #tpu.memory_space<vmem>>, vector<1x8x32xf32>
      %109 = vector.shape_cast %108 : vector<1x8x32xf32> to vector<8x32xf32>
      %110 = vector.shape_cast %107 : vector<8x32xf32> to vector<1x8x32xf32>
      tpu.vector_store %arg13[%c0_58, %c0_59, %c0_60], %110 {strides = array<i32>} : memref<1x8x32xf32, #tpu.memory_space<vmem>>, vector<1x8x32xf32>,
    } else {
    }
    %c0 = arith.constant 0 : index
    %c0_1 = arith.constant 0 : index
    %c0_2 = arith.constant 0 : index
    %3 = vector.load %arg13[%c0, %c0_1, %c0_2] : memref<1x8x32xf32, #tpu.memory_space<vmem>>, vector<1x8x32xf32>
    %4 = vector.shape_cast %3 : vector<1x8x32xf32> to vector<8x32xf32>
    %c0_3 = arith.constant 0 : index
    %c0_4 = arith.constant 0 : index
    %c0_5 = arith.constant 0 : index
    %5 = vector.load %arg3[%c0_3, %c0_4, %c0_5] : memref<1x1x32xf32, #tpu.memory_space<vmem>>, vector<1x1x32xf32>
    %6 = vector.shape_cast %5 : vector<1x1x32xf32> to vector<1x32xf32>
    %c0_6 = arith.constant 0 : index
    %c0_7 = arith.constant 0 : index
    %c0_8 = arith.constant 0 : index
    %7 = vector.load %arg4[%c0_6, %c0_7, %c0_8] : memref<1x1x32xf32, #tpu.memory_space<vmem>>, vector<1x1x32xf32>
    %8 = vector.shape_cast %7 : vector<1x1x32xf32> to vector<1x32xf32>
    %cst = arith.constant dense<0.000000e+00> : vector<8xf32>
    %9 = vector.multi_reduction <add>, %4, %cst [1] : vector<8x32xf32> to vector<8xf32>
    %10 = vector.shape_cast %9 : vector<8xf32> to vector<8x1xf32>
    %cst_9 = arith.constant 3.200000e+01 : f32
    %11 = vector.broadcast %cst_9 : f32 to vector<8x1xf32>
    %12 = arith.divf %10, %11 : vector<8x1xf32>
    %13 = vector.broadcast %12 : vector<8x1xf32> to vector<8x32xf32>
    %14 = arith.subf %4, %13 : vector<8x32xf32>
    %15 = arith.mulf %14, %14 : vector<8x32xf32>
    %cst_10 = arith.constant dense<0.000000e+00> : vector<8xf32>
    %16 = vector.multi_reduction <add>, %15, %cst_10 [1] : vector<8x32xf32> to vector<8xf32>
    %17 = vector.shape_cast %16 : vector<8xf32> to vector<8x1xf32>
    %cst_11 = arith.constant 3.200000e+01 : f32
    %18 = vector.broadcast %cst_11 : f32 to vector<8x1xf32>
    %19 = arith.divf %17, %18 : vector<8x1xf32>
    %20 = vector.broadcast %12 : vector<8x1xf32> to vector<8x32xf32>
    %21 = arith.subf %4, %20 : vector<8x32xf32>
    %cst_12 = arith.constant 9.99999974E-6 : f32
    %22 = vector.broadcast %cst_12 : f32 to vector<8x1xf32>
    %23 = arith.addf %19, %22 : vector<8x1xf32>
    %24 = math.rsqrt %23 : vector<8x1xf32>
    %25 = vector.broadcast %24 : vector<8x1xf32> to vector<8x32xf32>
    %26 = arith.mulf %21, %25 : vector<8x32xf32>
    %27 = vector.broadcast %6 : vector<1x32xf32> to vector<8x32xf32>
    %28 = arith.mulf %26, %27 : vector<8x32xf32>
    %29 = vector.broadcast %8 : vector<1x32xf32> to vector<8x32xf32>
    %30 = arith.addf %28, %29 : vector<8x32xf32>
    %c0_13 = arith.constant 0 : index
    %c0_14 = arith.constant 0 : index
    %c0_15 = arith.constant 0 : index
    %31 = vector.load %arg5[%c0_13, %c0_14, %c0_15] : memref<1x8x8xbf16, #tpu.memory_space<vmem>>, vector<1x8x8xbf16>
    %32 = vector.shape_cast %31 : vector<1x8x8xbf16> to vector<8x8xbf16>
    %33 = arith.truncf %30 : vector<8x32xf32> to vector<8x32xbf16>
    %cst_16 = arith.constant dense<0.000000e+00> : vector<8x32xf32>
    %34 = tpu.matmul %32, %33, %cst_16 {dimension_numbers = #tpu.dot_dimension_numbers<[1], [0], [0], [1], [0, 0, 1, 1], [], []>} : vector<8x8xbf16>, vector<8x32xbf16>, vector<8x32xf32> -> vector<8x32xf32>
    %c0_17 = arith.constant 0 : index
    %c0_18 = arith.constant 0 : index
    %c0_19 = arith.constant 0 : index
    %35 = vector.load %arg6[%c0_17, %c0_18, %c0_19] : memref<1x8x1xf32, #tpu.memory_space<vmem>>, vector<1x8x1xf32>
    %36 = vector.shape_cast %35 : vector<1x8x1xf32> to vector<8x1xf32>
    %37 = vector.broadcast %36 : vector<8x1xf32> to vector<8x32xf32>
    %38 = arith.addf %34, %37 : vector<8x32xf32>
    %cst_20 = arith.constant 5.000000e-01 : f32
    %39 = vector.broadcast %cst_20 : f32 to vector<8x32xf32>
    %40 = arith.mulf %39, %38 : vector<8x32xf32>
    %cst_21 = arith.constant 0.707106769 : f32
    %41 = vector.broadcast %cst_21 : f32 to vector<8x32xf32>
    %42 = arith.mulf %38, %41 : vector<8x32xf32>
    %43 = math.erf %42 : vector<8x32xf32>
    %cst_22 = arith.constant 1.000000e+00 : f32
    %44 = vector.broadcast %cst_22 : f32 to vector<8x32xf32>
    %45 = arith.addf %44, %43 : vector<8x32xf32>
    %46 = arith.mulf %40, %45 : vector<8x32xf32>
    %c0_23 = arith.constant 0 : index
    %c0_24 = arith.constant 0 : index
    %c0_25 = arith.constant 0 : index
    %47 = vector.load %arg7[%c0_23, %c0_24, %c0_25] : memref<1x8x8xbf16, #tpu.memory_space<vmem>>, vector<1x8x8xbf16>
    %48 = vector.shape_cast %47 : vector<1x8x8xbf16> to vector<8x8xbf16>
    %49 = arith.truncf %46 : vector<8x32xf32> to vector<8x32xbf16>
    %cst_26 = arith.constant dense<0.000000e+00> : vector<8x32xf32>
    %50 = tpu.matmul %48, %49, %cst_26 {dimension_numbers = #tpu.dot_dimension_numbers<[1], [0], [0], [1], [0, 0, 1, 1], [], []>} : vector<8x8xbf16>, vector<8x32xbf16>, vector<8x32xf32> -> vector<8x32xf32>
    %c0_27 = arith.constant 0 : index
    %c0_28 = arith.constant 0 : index
    %c0_29 = arith.constant 0 : index
    %51 = vector.load %arg8[%c0_27, %c0_28, %c0_29] : memref<1x8x1xf32, #tpu.memory_space<vmem>>, vector<1x8x1xf32>
    %52 = vector.shape_cast %51 : vector<1x8x1xf32> to vector<8x1xf32>
    %53 = vector.broadcast %52 : vector<8x1xf32> to vector<8x32xf32>
    %54 = arith.addf %50, %53 : vector<8x32xf32>
    %55 = arith.addf %4, %54 : vector<8x32xf32>
    %cst_30 = arith.constant dense<0.000000e+00> : vector<8xf32>
    %56 = vector.multi_reduction <add>, %55, %cst_30 [1] : vector<8x32xf32> to vector<8xf32>
    %57 = vector.shape_cast %56 : vector<8xf32> to vector<8x1xf32>
    %cst_31 = arith.constant 3.200000e+01 : f32
    %58 = vector.broadcast %cst_31 : f32 to vector<8x1xf32>
    %59 = arith.divf %57, %58 : vector<8x1xf32>
    %60 = vector.broadcast %59 : vector<8x1xf32> to vector<8x32xf32>
    %61 = arith.subf %55, %60 : vector<8x32xf32>
    %62 = arith.mulf %61, %61 : vector<8x32xf32>
    %cst_32 = arith.constant dense<0.000000e+00> : vector<8xf32>
    %63 = vector.multi_reduction <add>, %62, %cst_32 [1] : vector<8x32xf32> to vector<8xf32>
    %64 = vector.shape_cast %63 : vector<8xf32> to vector<8x1xf32>
    %cst_33 = arith.constant 3.200000e+01 : f32
    %65 = vector.broadcast %cst_33 : f32 to vector<8x1xf32>
    %66 = arith.divf %64, %65 : vector<8x1xf32>
    %67 = vector.broadcast %59 : vector<8x1xf32> to vector<8x32xf32>
    %68 = arith.subf %55, %67 : vector<8x32xf32>
    %cst_34 = arith.constant 9.99999974E-6 : f32
    %69 = vector.broadcast %cst_34 : f32 to vector<8x1xf32>
    %70 = arith.addf %66, %69 : vector<8x1xf32>
    %71 = math.rsqrt %70 : vector<8x1xf32>
    %72 = vector.broadcast %71 : vector<8x1xf32> to vector<8x32xf32>
    %73 = arith.mulf %68, %72 : vector<8x32xf32>
    %74 = vector.broadcast %6 : vector<1x32xf32> to vector<8x32xf32>
    %75 = arith.mulf %73, %74 : vector<8x32xf32>
    %76 = vector.broadcast %8 : vector<1x32xf32> to vector<8x32xf32>
    %77 = arith.addf %75, %76 : vector<8x32xf32>
    %78 = arith.truncf %77 : vector<8x32xf32> to vector<8x32xbf16>
    %c0_35 = arith.constant 0 : index
    %c0_36 = arith.constant 0 : index
    %c0_37 = arith.constant 0 : index
    %79 = vector.load %arg9[%c0_35, %c0_36, %c0_37] : memref<1x32x32xbf16, #tpu.memory_space<vmem>>, vector<1x32x32xbf16>
    %80 = vector.shape_cast %79 : vector<1x32x32xbf16> to vector<32x32xbf16>
    %cst_38 = arith.constant dense<0.000000e+00> : vector<8x32xf32>
    %81 = tpu.matmul %78, %80, %cst_38 {dimension_numbers = #tpu.dot_dimension_numbers<[1], [0], [0], [1], [0, 0, 1, 1], [], []>} : vector<8x32xbf16>, vector<32x32xbf16>, vector<8x32xf32> -> vector<8x32xf32>
    %c0_39 = arith.constant 0 : index
    %c0_40 = arith.constant 0 : index
    %c0_41 = arith.constant 0 : index
    %82 = vector.load %arg10[%c0_39, %c0_40, %c0_41] : memref<1x1x32xf32, #tpu.memory_space<vmem>>, vector<1x1x32xf32>
    %83 = vector.shape_cast %82 : vector<1x1x32xf32> to vector<1x32xf32>
    %84 = vector.broadcast %83 : vector<1x32xf32> to vector<8x32xf32>
    %85 = arith.addf %81, %84 : vector<8x32xf32>
    %cst_42 = arith.constant 5.000000e-01 : f32
    %86 = vector.broadcast %cst_42 : f32 to vector<8x32xf32>
    %87 = arith.mulf %86, %85 : vector<8x32xf32>
    %cst_43 = arith.constant 0.707106769 : f32
    %88 = vector.broadcast %cst_43 : f32 to vector<8x32xf32>
    %89 = arith.mulf %85, %88 : vector<8x32xf32>
    %90 = math.erf %89 : vector<8x32xf32>
    %cst_44 = arith.constant 1.000000e+00 : f32
    %91 = vector.broadcast %cst_44 : f32 to vector<8x32xf32>
    %92 = arith.addf %91, %90 : vector<8x32xf32>
    %93 = arith.mulf %87, %92 : vector<8x32xf32>
    %94 = arith.truncf %93 : vector<8x32xf32> to vector<8x32xbf16>
    %c0_45 = arith.constant 0 : index
    %c0_46 = arith.constant 0 : index
    %c0_47 = arith.constant 0 : index
    %95 = vector.load %arg11[%c0_45, %c0_46, %c0_47] : memref<1x32x32xbf16, #tpu.memory_space<vmem>>, vector<1x32x32xbf16>
    %96 = vector.shape_cast %95 : vector<1x32x32xbf16> to vector<32x32xbf16>
    %cst_48 = arith.constant dense<0.000000e+00> : vector<8x32xf32>
    %97 = tpu.matmul %94, %96, %cst_48 {dimension_numbers = #tpu.dot_dimension_numbers<[1], [0], [0], [1], [0, 0, 1, 1], [], []>} : vector<8x32xbf16>, vector<32x32xbf16>, vector<8x32xf32> -> vector<8x32xf32>
    %c0_49 = arith.constant 0 : index
    %c0_50 = arith.constant 0 : index
    %c0_51 = arith.constant 0 : index
    %98 = vector.load %arg12[%c0_49, %c0_50, %c0_51] : memref<1x1x32xf32, #tpu.memory_space<vmem>>, vector<1x1x32xf32>
    %99 = vector.shape_cast %98 : vector<1x1x32xf32> to vector<1x32xf32>
    %100 = vector.broadcast %99 : vector<1x32xf32> to vector<8x32xf32>
    %101 = arith.addf %97, %100 : vector<8x32xf32>
    %102 = arith.addf %55, %101 : vector<8x32xf32>
    %c0_52 = arith.constant 0 : index
    %c0_53 = arith.constant 0 : index
    %c0_54 = arith.constant 0 : index
    %103 = vector.load %arg13[%c0_52, %c0_53, %c0_54] : memref<1x8x32xf32, #tpu.memory_space<vmem>>, vector<1x8x32xf32>
    %104 = vector.shape_cast %103 : vector<1x8x32xf32> to vector<8x32xf32>
    %105 = vector.shape_cast %102 : vector<8x32xf32> to vector<1x8x32xf32>
    tpu.vector_store %arg13[%c0_52, %c0_53, %c0_54], %105 {strides = array<i32>} : memref<1x8x32xf32, #tpu.memory_space<vmem>>, vector<1x8x32xf32>,
    return
  }
  func.func @transform_0(%arg0: i32, %arg1: i32) -> (i32, i32, i32) {
    %c0_i32 = arith.constant 0 : i32
    %c0_i32_0 = arith.constant 0 : i32
    %c0_i32_1 = arith.constant 0 : i32
    return %arg0, %c0_i32, %c0_i32_0 : i32, i32, i32
  }
  func.func @transform_1(%arg0: i32, %arg1: i32) -> (i32, i32, i32) {
    %c0_i32 = arith.constant 0 : i32
    %c0_i32_0 = arith.constant 0 : i32
    %c0_i32_1 = arith.constant 0 : i32
    return %arg1, %c0_i32, %c0_i32_0 : i32, i32, i32
  }
  func.func @transform_2(%arg0: i32, %arg1: i32) -> (i32, i32, i32) {
    %c0_i32 = arith.constant 0 : i32
    %c0_i32_0 = arith.constant 0 : i32
    %c0_i32_1 = arith.constant 0 : i32
    return %arg1, %c0_i32, %c0_i32_0 : i32, i32, i32
  }
  func.func @transform_3(%arg0: i32, %arg1: i32) -> (i32, i32, i32) {
    %c0_i32 = arith.constant 0 : i32
    %c0_i32_0 = arith.constant 0 : i32
    %c0_i32_1 = arith.constant 0 : i32
    return %arg1, %c0_i32, %c0_i32_0 : i32, i32, i32
  }
  func.func @transform_4(%arg0: i32, %arg1: i32) -> (i32, i32, i32) {
    %c0_i32 = arith.constant 0 : i32
    %c0_i32_0 = arith.constant 0 : i32
    %c0_i32_1 = arith.constant 0 : i32
    return %arg1, %c0_i32, %c0_i32_0 : i32, i32, i32
  }
  func.func @transform_5(%arg0: i32, %arg1: i32) -> (i32, i32, i32) {
    %c0_i32 = arith.constant 0 : i32
    %c0_i32_0 = arith.constant 0 : i32
    %c0_i32_1 = arith.constant 0 : i32
    return %arg1, %c0_i32, %c0_i32_0 : i32, i32, i32
  }
  func.func @transform_6(%arg0: i32, %arg1: i32) -> (i32, i32, i32) {
    %c0_i32 = arith.constant 0 : i32
    %c0_i32_0 = arith.constant 0 : i32
    %c0_i32_1 = arith.constant 0 : i32
    return %arg1, %c0_i32, %c0_i32_0 : i32, i32, i32
  }
  func.func @transform_7(%arg0: i32, %arg1: i32) -> (i32, i32, i32) {
    %c0_i32 = arith.constant 0 : i32
    %c0_i32_0 = arith.constant 0 : i32
    %c0_i32_1 = arith.constant 0 : i32
    return %arg1, %c0_i32, %c0_i32_0 : i32, i32, i32
  }
  func.func @transform_8(%arg0: i32, %arg1: i32) -> (i32, i32, i32) {
    %c0_i32 = arith.constant 0 : i32
    %c0_i32_0 = arith.constant 0 : i32
    %c0_i32_1 = arith.constant 0 : i32
    return %arg1, %c0_i32, %c0_i32_0 : i32, i32, i32
  }
  func.func @transform_9(%arg0: i32, %arg1: i32) -> (i32, i32, i32) {
    %c0_i32 = arith.constant 0 : i32
    %c0_i32_0 = arith.constant 0 : i32
    %c0_i32_1 = arith.constant 0 : i32
    return %arg1, %c0_i32, %c0_i32_0 : i32, i32, i32
  }
  func.func @transform_10(%arg0: i32, %arg1: i32) -> (i32, i32, i32) {
    %c0_i32 = arith.constant 0 : i32
    %c0_i32_0 = arith.constant 0 : i32
    %c0_i32_1 = arith.constant 0 : i32
    return %arg1, %c0_i32, %c0_i32_0 : i32, i32, i32
  }
  func.func @transform_11(%arg0: i32, %arg1: i32) -> (i32, i32, i32) {
    %c0_i32 = arith.constant 0 : i32
    %c0_i32_0 = arith.constant 0 : i32
    %c0_i32_1 = arith.constant 0 : i32
    return %arg0, %c0_i32, %c0_i32_0 : i32, i32, i32
  }
}

module attributes {stable_mosaic.version = 11 : i64} {
  func.func @_head_kernel(%arg0: i32, %arg1: memref<2x8x32xf32, #tpu.memory_space<vmem>>, %arg2: memref<1x32xf32, #tpu.memory_space<vmem>>, %arg3: memref<1x32xf32, #tpu.memory_space<vmem>>, %arg4: memref<32x3xf32, #tpu.memory_space<vmem>>, %arg5: memref<1x3xf32, #tpu.memory_space<vmem>>, %arg6: memref<2x3xf32, #tpu.memory_space<vmem>>) attributes {dimension_semantics = [#tpu.dimension_semantics<parallel>], iteration_bounds = array<i64: 1>, scalar_prefetch = 0 : i64, scratch_operands = 0 : i64, tpu.core_type = #tpu.core_type<tc>, window_params = [{transform_indices = @transform_0, window_bounds = array<i64: 2, 8, 32>}, {pipeline_mode = #tpu.pipeline_mode<synchronous>, transform_indices = @transform_1, window_bounds = array<i64: 1, 32>}, {pipeline_mode = #tpu.pipeline_mode<synchronous>, transform_indices = @transform_2, window_bounds = array<i64: 1, 32>}, {pipeline_mode = #tpu.pipeline_mode<synchronous>, transform_indices = @transform_3, window_bounds = array<i64: 32, 3>}, {pipeline_mode = #tpu.pipeline_mode<synchronous>, transform_indices = @transform_4, window_bounds = array<i64: 1, 3>}, {transform_indices = @transform_5, window_bounds = array<i64: 2, 3>}]} {
    %c0 = arith.constant 0 : index
    %c0_0 = arith.constant 0 : index
    %c0_1 = arith.constant 0 : index
    %0 = vector.load %arg1[%c0, %c0_0, %c0_1] : memref<2x8x32xf32, #tpu.memory_space<vmem>>, vector<2x8x32xf32>
    %c0_2 = arith.constant 0 : index
    %c0_3 = arith.constant 0 : index
    %1 = vector.load %arg2[%c0_2, %c0_3] : memref<1x32xf32, #tpu.memory_space<vmem>>, vector<1x32xf32>
    %c0_4 = arith.constant 0 : index
    %c0_5 = arith.constant 0 : index
    %2 = vector.load %arg3[%c0_4, %c0_5] : memref<1x32xf32, #tpu.memory_space<vmem>>, vector<1x32xf32>
    %cst = arith.constant dense<0.000000e+00> : vector<2x8xf32>
    %3 = vector.multi_reduction <add>, %0, %cst [2] : vector<2x8x32xf32> to vector<2x8xf32>
    %4 = vector.shape_cast %3 : vector<2x8xf32> to vector<2x8x1xf32>
    %cst_6 = arith.constant 3.200000e+01 : f32
    %5 = vector.broadcast %cst_6 : f32 to vector<2x8x1xf32>
    %6 = arith.divf %4, %5 : vector<2x8x1xf32>
    %7 = vector.broadcast %6 : vector<2x8x1xf32> to vector<2x8x32xf32>
    %8 = arith.subf %0, %7 : vector<2x8x32xf32>
    %9 = arith.mulf %8, %8 : vector<2x8x32xf32>
    %cst_7 = arith.constant dense<0.000000e+00> : vector<2x8xf32>
    %10 = vector.multi_reduction <add>, %9, %cst_7 [2] : vector<2x8x32xf32> to vector<2x8xf32>
    %11 = vector.shape_cast %10 : vector<2x8xf32> to vector<2x8x1xf32>
    %cst_8 = arith.constant 3.200000e+01 : f32
    %12 = vector.broadcast %cst_8 : f32 to vector<2x8x1xf32>
    %13 = arith.divf %11, %12 : vector<2x8x1xf32>
    %14 = vector.broadcast %6 : vector<2x8x1xf32> to vector<2x8x32xf32>
    %15 = arith.subf %0, %14 : vector<2x8x32xf32>
    %cst_9 = arith.constant 9.99999974E-6 : f32
    %16 = vector.broadcast %cst_9 : f32 to vector<2x8x1xf32>
    %17 = arith.addf %13, %16 : vector<2x8x1xf32>
    %18 = math.rsqrt %17 : vector<2x8x1xf32>
    %19 = vector.broadcast %18 : vector<2x8x1xf32> to vector<2x8x32xf32>
    %20 = arith.mulf %15, %19 : vector<2x8x32xf32>
    %21 = vector.shape_cast %1 : vector<1x32xf32> to vector<1x1x32xf32>
    %22 = vector.broadcast %21 : vector<1x1x32xf32> to vector<2x8x32xf32>
    %23 = arith.mulf %20, %22 : vector<2x8x32xf32>
    %24 = vector.shape_cast %2 : vector<1x32xf32> to vector<1x1x32xf32>
    %25 = vector.broadcast %24 : vector<1x1x32xf32> to vector<2x8x32xf32>
    %26 = arith.addf %23, %25 : vector<2x8x32xf32>
    %cst_10 = arith.constant dense<0.000000e+00> : vector<2x32xf32>
    %27 = vector.multi_reduction <add>, %26, %cst_10 [1] : vector<2x8x32xf32> to vector<2x32xf32>
    %cst_11 = arith.constant 8.000000e+00 : f32
    %28 = vector.broadcast %cst_11 : f32 to vector<2x32xf32>
    %29 = arith.divf %27, %28 : vector<2x32xf32>
    %c0_12 = arith.constant 0 : index
    %c0_13 = arith.constant 0 : index
    %30 = vector.load %arg4[%c0_12, %c0_13] : memref<32x3xf32, #tpu.memory_space<vmem>>, vector<32x3xf32>
    %cst_14 = arith.constant dense<0.000000e+00> : vector<2x3xf32>
    %31 = tpu.matmul %29, %30, %cst_14 {dimension_numbers = #tpu.dot_dimension_numbers<[1], [0], [0], [1], [0, 0, 1, 1], [], []>} : vector<2x32xf32>, vector<32x3xf32>, vector<2x3xf32> -> vector<2x3xf32>
    %c0_15 = arith.constant 0 : index
    %c0_16 = arith.constant 0 : index
    %32 = vector.load %arg5[%c0_15, %c0_16] : memref<1x3xf32, #tpu.memory_space<vmem>>, vector<1x3xf32>
    %33 = vector.broadcast %32 : vector<1x3xf32> to vector<2x3xf32>
    %34 = arith.addf %31, %33 : vector<2x3xf32>
    %c0_17 = arith.constant 0 : index
    %c0_18 = arith.constant 0 : index
    %35 = vector.load %arg6[%c0_17, %c0_18] : memref<2x3xf32, #tpu.memory_space<vmem>>, vector<2x3xf32>
    tpu.vector_store %arg6[%c0_17, %c0_18], %34 {strides = array<i32>} : memref<2x3xf32, #tpu.memory_space<vmem>>, vector<2x3xf32>,
    return
  }
  func.func @transform_0(%arg0: i32) -> (i32, i32, i32) {
    %c0_i32 = arith.constant 0 : i32
    %c0_i32_0 = arith.constant 0 : i32
    %c0_i32_1 = arith.constant 0 : i32
    return %arg0, %c0_i32, %c0_i32_0 : i32, i32, i32
  }
  func.func @transform_1(%arg0: i32) -> (i32, i32) {
    %c0_i32 = arith.constant 0 : i32
    %c0_i32_0 = arith.constant 0 : i32
    %c0_i32_1 = arith.constant 0 : i32
    return %c0_i32, %c0_i32_0 : i32, i32
  }
  func.func @transform_2(%arg0: i32) -> (i32, i32) {
    %c0_i32 = arith.constant 0 : i32
    %c0_i32_0 = arith.constant 0 : i32
    %c0_i32_1 = arith.constant 0 : i32
    return %c0_i32, %c0_i32_0 : i32, i32
  }
  func.func @transform_3(%arg0: i32) -> (i32, i32) {
    %c0_i32 = arith.constant 0 : i32
    %c0_i32_0 = arith.constant 0 : i32
    %c0_i32_1 = arith.constant 0 : i32
    return %c0_i32, %c0_i32_0 : i32, i32
  }
  func.func @transform_4(%arg0: i32) -> (i32, i32) {
    %c0_i32 = arith.constant 0 : i32
    %c0_i32_0 = arith.constant 0 : i32
    %c0_i32_1 = arith.constant 0 : i32
    return %c0_i32, %c0_i32_0 : i32, i32
  }
  func.func @transform_5(%arg0: i32) -> (i32, i32) {
    %c0_i32 = arith.constant 0 : i32
    %c0_i32_0 = arith.constant 0 : i32
    return %arg0, %c0_i32 : i32, i32
  }
}

</mosaic_0001>

<bundles_post_ra>
// kernel: mlp_mixer_forward.3
= control target key start
LH: loop header
LB: loop body
LE: loop exit
PB: predicated region body
PF: predicated region fallthrough
CT: control target
= control target key end

     0   :  { %v144_v0 = vmov 0.0   ;;  %vm145_vm0 = vmmov 0   ;;  %vm61_vm1 = vcmask 523264   ;;  %vm106_vm2 = vcmask 261120   ;;  %s190_s1 = inlined_call_operand.vmem [shape: bf16[64,32], index: 1, kind: input, shape index: {}]   ;;  %s191_s0 = inlined_call_operand.vmem [shape: bf16[16,64], index: 0, kind: input, shape index: {}]   ;;  %s192_s2 = inlined_call_operand.vmem [shape: f32[1,32], index: 2, kind: input, shape index: {}]   ;;  %s193_s3 = inlined_call_operand.vmem [shape: f32[16,32], index: 3, kind: output, shape index: {}]  }
   0x1   :  { %125 = vmatprep.subr.bf16.mxu0 %v144_v0  ;;  %v139_v1 = vld [vmem:[%s190_s1] sm:$0xff]   ;;  %133 = vmatprep.mubr.msk.bf16.mxu0 %vm145_vm0, %v144_v0  ;;  %v140_v2 = vld [vmem:[%s190_s1 + $0x8] sm:$0xff]   ;;  %v141_v3 = vld [vmem:[%s190_s1 + $0x10] sm:$0xff]  }
   0x2   :  { %126 = vmatpush3.bf16.msra.mxu0 %v139_v1  ;;  %v142_v4 = vld [vmem:[%s190_s1 + $0x18] sm:$0xff]   ;;  %v143_v5 = vld [vmem:[%s191_s0] sm:$0xff]  }
   0x3   :  { %127 = vmatprep.subr.bf16.mxu0 %v144_v0  ;;  %v113_v6 = vld [vmem:[%s192_s2] ss:$0 sm:$0xff] }
   0x6   :  { %128 = vmatpush3.bf16.msra.mxu0 %v140_v2 }
   0x7   :  { %129 = vmatprep.subr.bf16.mxu0 %v144_v0 }
   0xa   :  { %130 = vmatpush3.bf16.msra.mxu0 %v141_v3 }
   0xb   :  { %131 = vmatprep.subr.bf16.mxu0 %v144_v0 }
   0xe   :  { %132 = vmatpush3.bf16.msra.mxu0 %v142_v4 }
  0x11   :  { %134 = vmatmul.mubr.msk.bf16.vlgmr.msra.gmra.mrb[0].mxu0 %vm61_vm1, %v143_v5 }
  0xe4   :  { %v99_v7 = vpop.f32.mrb[0].mxu0 }
  0xe5   :  { %v100_v8 = vadd.f32 %v113_v6, %v99_v7  ;;  %v135_v9 = vpop.f32.mrb[1].mxu0 }
  0xe6   :  { %v102_v10 = vpop.f32.mrb[2].mxu0 }
  0xe7   :  { %107 = vst.msk [vmem:[%s193_s3] sm:$0xff] %vm106_vm2, %v100_v8  ;;  %v103_v11 = vadd.f32 %v113_v6, %v102_v10  ;;  %v136_v12 = vpop.f32.mrb[3].mxu0 }
  0xe9   :  { %108 = vst.msk [vmem:[%s193_s3 + $0x8] sm:$0xff] %vm106_vm2, %v103_v11 }

// kernel: mlp_mixer_forward.5
= control target key start
LH: loop header
LB: loop body
LE: loop exit
PB: predicated region body
PF: predicated region fallthrough
CT: control target
= control target key end

     0   :  { %vm25_vm0 = vcmask 261120   ;;  %s327_s0 = inlined_call_operand.vmem [shape: f32[2,8,32], index: 0, kind: input, shape index: {}]   ;;  %s328_s1 = inlined_call_operand.vmem [shape: f32[1,32], index: 1, kind: input, shape index: {}]   ;;  %s329_s2 = inlined_call_operand.vmem [shape: f32[1,32], index: 2, kind: input, shape index: {}]   ;;  %s330_s3 = inlined_call_operand.vmem [shape: f32[32,3], index: 3, kind: input, shape index: {}]   ;;  %s331_s4 = inlined_call_operand.vmem [shape: f32[1,3], index: 4, kind: input, shape index: {}]   ;;  %s332_s5 = inlined_call_operand.hbm [shape: f32[2,3], index: 5, kind: output, shape index: {}]  }
   0x1   :  { %v21_v0 = vld [vmem:[%s327_s0] sm:$0xff]  ;;  %v22_v1 = vld [vmem:[%s327_s0 + $0x8] sm:$0xff] }
   0x2   :  { %10 = vsyncpa [#allocation3], 0  ;;  %v26_v2 = vsel %vm25_vm0, %v21_v0, 0.0  ;;  %v29_v3 = vsel %vm25_vm0, %v22_v1, 0.0  ;;  %v86_v14 = vld [vmem:[%s330_s3] sm:$0xff]  ;;  %v87_v15 = vld [vmem:[%s330_s3 + $0x8] sm:$0xff] }
   0x3   :  { %27 = vadd.xlane.f32.xlu0 %v26_v2  ;;  %v88_v16 = vld [vmem:[%s330_s3 + $0x10] sm:$0xff]  ;;  %v247_v17 = vmov 0.0|0.0   ;;  %v210_v18 = vpack.c.bf16 %v87_v15, %v86_v14  ;;  %v89_v19 = vld [vmem:[%s330_s3 + $0x18] sm:$0xff]  ;;  %vm248_vm1 = vmmov 0   ;;  %v249_v20 = vmov 0.0   ;;  %s250_s7 = smov [#allocation2]  }
   0x4   :  { %209 = vmatprep.subr.bf16.mxu0 %v247_v17  ;;  %206 = vmatprep.mubr.msk.f32.mxu0 %vm248_vm1, %v249_v20  ;;  %v213_v21 = vpack.c.bf16 %v89_v19, %v88_v16  ;;  %v189_v29 = vld [vmem:[%s328_s1] ss:$0 sm:$0xff]  ;;  %vm99_vm2 = vcmask 1041409   ;;  %s181_s8 = sshll.u32 %s250_s7, 4  ;;  %vm173_vm3 = vcmask 17408   ;;  %s182_s8 = int_to_ptr.vmem [resolvable:$true] %s181_s8 }
   0x5   :  { %211 = vmatpush3.bf16.msra.mxu0 %v210_v18  ;;  %v190_v31 = vld [vmem:[%s329_s2] ss:$0 sm:$0xff]  ;;  %s223_s9 = scalar_lea.vmem %s182_s8, 32  ;;  %p228_p1 = scmp.lt.s32.totalorder %s182_s8, %s182_s8 }
   0x6   :  { %212 = vmatprep.subr.bf16.mxu0 %v247_v17  ;;  %v191_v55 = vld [vmem:[%s331_s4] ss:$0 sm:$0xff]  ;;  %p224_p0 = scmp.ne.s32.totalorder %s182_s8, %s223_s9  ;;  %p229_p2 = scmp.lt.s32.totalorder %s223_s9, %s223_s9 }
   0x7   :  { %30 = vadd.xlane.f32.xlu0 %v29_v3 }
   0x8   :  { %p230_p3 = por %p229_p2, %p228_p1 }
   0x9   :  { %214 = vmatpush3.bf16.msra.mxu0 %v213_v21 }
   0xa   :  { %p231_p4 = pnand %p230_p3, %p224_p0 }
  0x90   :  { %v28_v4 = vpop.xlane.xlu0 %27 }
  0x91   :  { %v33_v5 = vmul.f32 0.03125, %v28_v4 }
  0x93   :  { %v35_v6 = vsub.f32 %v21_v0, %v33_v5 }
  0x94   :  { %v31_v7 = vpop.xlane.xlu0 %30 }
  0x95   :  { %v34_v8 = vmul.f32 0.03125, %v31_v7  ;;  %v37_v9 = vmul.f32 %v35_v6, %v35_v6 }
  0x97   :  { %v36_v10 = vsub.f32 %v22_v1, %v34_v8  ;;  %v39_v11 = vsel %vm25_vm0, %v37_v9, 0.0 }
  0x98   :  { %40 = vadd.xlane.f32.xlu1 %v39_v11 }
  0x99   :  { %v38_v12 = vmul.f32 %v36_v10, %v36_v10 }
  0x9b   :  { %v42_v13 = vsel %vm25_vm0, %v38_v12, 0.0 }
  0x9c   :  { %43 = vadd.xlane.f32.xlu1 %v42_v13 }
 0x125   :  { %v41_v22 = vpop.xlane.xlu1 %40 }
 0x126   :  { %v45_v23 = vmul.f32 0.03125, %v41_v22 }
 0x128   :  { %v47_v24 = vadd.f32 1e-05, %v45_v23 }
 0x129   :  { %v44_v25 = vpop.xlane.xlu1 %43 }
 0x12a   :  { %219 = vrsqrt.f32 %v47_v24  ;;  %v46_v26 = vmul.f32 0.03125, %v44_v25 }
 0x12c   :  { %v48_v27 = vadd.f32 1e-05, %v46_v26 }
 0x12e   :  { %221 = vrsqrt.f32 %v48_v27 }
 0x134   :  { %v220_v28 = vpop.eup %219 }
 0x135   :  { %v51_v30 = vmul.f32 %v220_v28, %v35_v6 }
 0x137   :  { %v59_v32 = vmul.f32 %v189_v29, %v51_v30 }
 0x138   :  { %v222_v33 = vpop.eup %221 }
 0x139   :  { %v52_v34 = vmul.f32 %v222_v33, %v36_v10  ;;  %v67_v35 = vadd.f32 %v190_v31, %v59_v32 }
 0x13b   :  { %v60_v36 = vmul.f32 %v189_v29, %v52_v34  ;;  %v69_v37 = vsel %vm25_vm0, %v67_v35, 0.0 }
 0x13c   :  { %v70_v38 = vrot.slane %v69_v37, 4 }
 0x13d   :  { %v68_v39 = vadd.f32 %v190_v31, %v60_v36 }
 0x13e   :  { %v71_v40 = vadd.f32 %v70_v38, %v69_v37 }
 0x13f   :  { %v76_v41 = vsel %vm25_vm0, %v68_v39, 0.0 }
 0x140   :  { %v72_v42 = vrot.slane %v71_v40, 2  ;;  %v77_v43 = vrot.slane %v76_v41, 4 }
 0x142   :  { %v73_v44 = vadd.f32 %v72_v42, %v71_v40  ;;  %v78_v45 = vadd.f32 %v77_v43, %v76_v41 }
 0x144   :  { %v74_v46 = vrot.slane %v73_v44, 1  ;;  %v79_v47 = vrot.slane %v78_v45, 2 }
 0x146   :  { %v80_v48 = vadd.f32 %v79_v47, %v78_v45  ;;  %v75_v49 = vadd.f32 %v74_v46, %v73_v44 }
 0x148   :  { %v81_v50 = vrot.slane %v80_v48, 1  ;;  %v84_v52 = vmul.f32 0.125, %v75_v49 }
 0x14a   :  { %v82_v51 = vadd.f32 %v81_v50, %v80_v48 }
 0x14c   :  { %v85_v53 = vmul.f32 0.125, %v82_v51 }
 0x14e   :  { %v100_v54 = vsel %vm99_vm2, %v85_v53, %v84_v52 }
 0x14f   :  { %207 = vmatmul.mubr.msk.f32.vlgmr.msra.gmra.mrb[0].mxu0 %vm25_vm0, %v100_v54 }
 0x222   :  { %v169_v56 = vpop.f32.mrb[0].mxu0 }
 0x223   :  { %v170_v57 = vadd.f32 %v191_v55, %v169_v56  ;;  %v208_v58 = vpop.f32.mrb[1].mxu0 }
 0x225   :  { %174 = vst.msk [vmem:[#allocation2] sm:$0x3] %vm173_vm3, %v170_v57 }
 0x226   :  { %234 = shalt.err (!%p231_p4)
}
 0x227   :  { %s235_s12 = scalar_lea.hbm %s332_s5, 32 }
 0x228   :  { %p236_p5 = scmp.ne.s32.totalorder %s332_s5, %s235_s12  ;;  %p239_p6 = scmp.lt.u32.totalorder %s235_s12, %s332_s5 }
 0x22a   :  { %p241_p7 = pnand %p239_p6, %p236_p5 }
 0x22c   :  { %244 = shalt.err (!%p241_p7)
}
 0x22d   :  { %184 = dma.vmem_to_hbm [thread:$0]  %s182_s8, 32, %s332_s5, [#allocation3]  }
 0x22e   :  { %245 = dma.done.wait [#allocation3], 32  }
 0x22f   :  { %246 = vsyncadd [#allocation3], 4294967264 }
 0x230   :  { %188 = vsyncpa [#allocation3], 1 }

// kernel: mlp_mixer_forward.4
= control target key start
LH: loop header
LB: loop body
LE: loop exit
PB: predicated region body
PF: predicated region fallthrough
CT: control target
= control target key end

     0   :  { %s1272_s17 = smov 0   ;;  %s1274_s18 = smov 0   ;;  %s1442_s0 = inlined_call_operand.vmem [shape: f32[2,8,32], index: 0, kind: input, shape index: {}, may-alias: {0,11}]   ;;  %s1443_s1 = inlined_call_operand.vmem [shape: f32[2,1,32], index: 1, kind: input, shape index: {}]   ;;  %s1444_s2 = inlined_call_operand.vmem [shape: f32[2,1,32], index: 2, kind: input, shape index: {}]   ;;  %s1445_s3 = inlined_call_operand.vmem [shape: bf16[2,8,8], index: 3, kind: input, shape index: {}]   ;;  %s1446_s4 = inlined_call_operand.vmem [shape: f32[2,8,1], index: 4, kind: input, shape index: {}]   ;;  %s1447_s5 = inlined_call_operand.vmem [shape: bf16[2,8,8], index: 5, kind: input, shape index: {}]   ;;  %s1448_s6 = inlined_call_operand.vmem [shape: f32[2,8,1], index: 6, kind: input, shape index: {}]   ;;  %s1449_s7 = inlined_call_operand.vmem [shape: bf16[2,32,32], index: 7, kind: input, shape index: {}]   ;;  %s1450_s8 = inlined_call_operand.vmem [shape: f32[2,1,32], index: 8, kind: input, shape index: {}]   ;;  %s1451_s9 = inlined_call_operand.vmem [shape: bf16[2,32,32], index: 9, kind: input, shape index: {}]   ;;  %s1452_s10 = inlined_call_operand.vmem [shape: f32[2,1,32], index: 10, kind: input, shape index: {}]   ;;  %s1453_s11 = inlined_call_operand.vmem [shape: f32[2,8,32], index: 11, kind: output, shape index: {}, may-alias: {0,11}]  }
   0x1   :  { %1457 = sst [smem:[#allocation7_spill]] %s1442_s0  ;;  %s1276_s19 = smov 0  }
   0x2   :  { %1458 = sst [smem:[#allocation8_spill]] %s1444_s2  ;;  %s1278_s20 = smov 0  }
   0x3   :  { %1459 = sst [smem:[#allocation9_spill]] %s1445_s3  ;;  %s1280_s21 = smov 0  }
   0x4   :  { %1460 = sst [smem:[#allocation10_spill]] %s1446_s4 }
   0x5   :  { %1461 = sst [smem:[#allocation11_spill]] %s1447_s5 }
   0x6 LB: > { %1462 = sst [smem:[#allocation2_spill]] %s1199_s19  ;;  %s30_s22 = sadd.s32 1, %s1199_s19  ;;  %s1207_s21 = sphi %s1280_s21, %s21_s21   ;;  %s1203_s20 = sphi %s1278_s20, %s1479_s20   ;;  %s1199_s19 = sphi %s1276_s19, %s1478_s19   ;;  %s1195_s18 = sphi %s1274_s18, %s1477_s18   ;;  %s1191_s17 = sphi %s1272_s17, %s1476_s17  }
   0x7   : > { %1463 = sst [smem:[#allocation3_spill]] %s1203_s20  ;;  %s33_s23 = sadd.s32 1, %s1203_s20 }
   0x8   : > { %1464 = sst [smem:[#allocation4_spill]] %s1207_s21  ;;  %p31_p0 = scmp.ge.s32.totalorder %s30_s22, 2 }
   0x9   : > { %p1046_p1 = scmp.ge.s32.totalorder %s1207_s21, 1  ;;  %p436_p2 = scmp.lt.s32.totalorder %s1207_s21, 5 }
   0xa   : > { %s1481_s22 = smov (%p31_p0, %s30_s22), 0  ;;  %s1483_s23 = smov (!%p31_p0, %s33_s23), %s1203_s20 }
   0xb   : > { %1465 = sst [smem:[#allocation5_spill]] %s1481_s22  ;;  %p437_p3 = pnand %p1046_p1, %p436_p2 }
   0xc   : > { %p35_p4 = scmp.ge.s32.totalorder %s1483_s23, 2  ;;  %p512_p5 = scmp.lt.s32.totalorder (!%p437_p3), %s1195_s18, 1 }
   0xd   : > { %440 = sbr.rel (%p437_p3) target bundleno = 1575 (0x627), region = 64  ;;  %p516_p6 = scmp.lt.s32.totalorder (!%p437_p3), %s1191_s17, 1 }
   0xe   : > { %s1485_s23 = smov (%p35_p4, %s1483_s23), 0  ;;  %s1467_s0 = sld [smem:[#allocation7_spill]] (!%p437_p3) }
   0xf   : > { %1466 = sst [smem:[#allocation6_spill]] %s1485_s23  ;;  %s1469_s3 = sld [smem:[#allocation9_spill]] (!%p437_p3) }
  0x10   : > { %s1470_s4 = sld [smem:[#allocation10_spill]] (!%p437_p3)  ;;  %s1471_s5 = sld [smem:[#allocation11_spill]] (!%p437_p3) }
  0x11   : > { %p1057_p7 = scmp.ne.s32.totalorder (!%p437_p3), %s1191_s17, 0 }
  0x14   : > { %s1487_s18 = smov (!%p512_p5, %s1195_s18), 1  ;;  %vm564_vm0 = vcmask (!%p1057_p7), 261120  }
  0x15   : > { %s1306_s24 = scalar_select %p516_p6, %s1191_s17, 1 }
  0x16   : > { %s1047_s25 = sshll.u32 %s1487_s18, 3 }
  0x17   : > { %s515_s28 = scalar_lea.vmem %s1467_s0, %s1047_s25  ;;  %s1048_s16 = sshll.u32 %s1306_s24, 2 }
  0x18   : > { %s1323_s20 = scalar_lea.vmem %s1469_s3, %s1048_s16  ;;  %s1049_s19 = sshll.u32 %s1306_s24, 3  ;;  %v563_v0 = vld [vmem:[%s515_s28] sm:$0xff] (!%p1057_p7) }
  0x19   : > { %s1329_s26 = scalar_lea.vmem %s1470_s4, %s1049_s19  ;;  %s1334_s29 = scalar_lea.vmem %s1471_s5, %s1048_s16 }
  0x1a   : > { %s1339_s14 = scalar_lea.vmem %s1448_s6, %s1049_s19  ;;  %s1072_s15 = sshll.u32 %s1306_s24, 4 }
  0x1b   : > { %s1345_s12 = scalar_lea.vmem %s1449_s7, %s1072_s15  ;;  %s545_s18 = scalar_lea.vmem %s1450_s8, %s1306_s24 }
  0x1c   : > { %s1354_s0 = scalar_lea.vmem %s1451_s9, %s1072_s15  ;;  %s553_s19 = scalar_lea.vmem %s1452_s10, %s1306_s24 }
  0x1d   : > { %s1363_s5 = scalar_lea.vmem %s1453_s11, %s1047_s25  ;;  %562 = sbr.rel (%p1057_p7) target bundleno = 36 (0x24), region = 68 }
  0x1e   : > { %565 = vst.msk [vmem:[%s1363_s5] sm:$0xff] (!%p1057_p7), %vm564_vm0, %v563_v0 }
  0x24 PF: > { %vm569_vm1 = vcmask 261120   ;;  %v1209_v8 = vmov 0.0   ;;  %vm1210_vm2 = vmmov 0   ;;  %v600_v9 = vld [vmem:[%s1329_s26] sm:$0xff]  ;;  %v1211_v10 = vmov 0   ;;  %s1472_s4 = scalar_lea.vmem %s1443_s1, %s1306_s24  ;;  %s1473_s28 = sld [smem:[#allocation8_spill]] }
  0x25   : > { %v1368_v1 = vld [vmem:[%s1363_s5] sm:$0xff]  ;;  %1084 = vmatprep.subr.bf16.mxu0 %v1209_v8  ;;  %1090 = vmatprep.subr.bf16.mxu1 %v1209_v8  ;;  %vm610_vm3 = vcmask 1043456   ;;  %vm606_vm4 = vcmask 64512   ;;  %v1158_v52 = vld [vmem:[%s1345_s12 + $0x8] sm:$0xff]  }
  0x26   : > { %v570_v2 = vsel %vm569_vm1, %v1368_v1, 0.0  ;;  %1086 = vmatprep.mubr.msk.bf16.mxu0 %vm1210_vm2, %v1209_v8  ;;  %1092 = vmatprep.mubr.msk.bf16.mxu1 %vm1210_vm2, %v1209_v8  ;;  %v661_v11 = vld [vmem:[%s1339_s14] sm:$0xff]  ;;  %v1160_v62 = vld [vmem:[%s1354_s0 + $0x8] sm:$0xff]  }
  0x27   : > { %571 = vadd.xlane.f32.xlu0 %v570_v2  ;;  %1155 = vset.pattern.permute.xlu1 %v1211_v10  ;;  %v1058_v16 = vld [vmem:[%s1472_s4] ss:$0 sm:$0xff] }
  0x28   : > { %1156 = vset.pattern.permute.xlu0 %v1211_v10  ;;  %603 = vperm.xlu1 %1155, %v600_v9   ;;  %v598_v23 = vld [vmem:[%s1323_s20] sm:$0xf] }
  0x29   : > { %v659_v37 = vld [vmem:[%s1334_s29] sm:$0xf] }
  0x2a   : > { %s1474_s15 = scalar_lea.vmem %s1473_s28, %s1306_s24  ;;  %v1157_v51 = vld [vmem:[%s1345_s12] sm:$0xff]  }
  0x2b   : > { %v1059_v18 = vld [vmem:[%s1474_s15] ss:$0 sm:$0xff] }
  0x2c   : > { %664 = vperm.xlu1 %1155, %v661_v11   ;;  %v1159_v61 = vld [vmem:[%s1354_s0] sm:$0xff]  }
  0x2d   : > { %v1062_v63 = vld [vmem:[%s545_s18] ss:$0 sm:$0xff] }
  0x2e   : > { %v1066_v11 = vld [vmem:[%s553_s19] ss:$0 sm:$0xff] }
  0xa7   : > { %v604_v24 = vpop.permute.xlu1 %603 }
  0xab   : > { %v665_v38 = vpop.permute.xlu1 %664 }
  0xb4   : > { %v572_v3 = vpop.xlane.xlu0 %571 }
  0xb5   : > { %v574_v4 = vmul.f32 0.03125, %v572_v3 }
  0xb7   : > { %v575_v5 = vsub.f32 %v1368_v1, %v574_v4 }
  0xb9   : > { %v576_v6 = vmul.f32 %v575_v5, %v575_v5 }
  0xbb   : > { %v577_v7 = vsel %vm569_vm1, %v576_v6, 0.0 }
  0xbc   : > { %578 = vadd.xlane.f32.xlu0 %v577_v7 }
 0x149   : > { %v579_v12 = vpop.xlane.xlu0 %578 }
 0x14a   : > { %v580_v13 = vmul.f32 0.03125, %v579_v12 }
 0x14c   : > { %v581_v14 = vadd.f32 1e-05, %v580_v13 }
 0x14e   : > { %1161 = vrsqrt.f32 %v581_v14 }
 0x158   : > { %v1162_v15 = vpop.eup %1161 }
 0x159   : > { %v583_v17 = vmul.f32 %v1162_v15, %v575_v5 }
 0x15b   : > { %v590_v19 = vmul.f32 %v1058_v16, %v583_v17 }
 0x15d   : > { %v597_v20 = vadd.f32 %v1059_v18, %v590_v19 }
 0x15f   : > { %v599_v21 = vpack.c.bf16 %v597_v20, %v597_v20 }
 0x161   : > { %v612_v22 = vsel %vm610_vm3, %v599_v21, 0 }
 0x162   : > { %1085 = vmatpush3.bf16.msra.mxu0 %v612_v22 }
 0x163   : > { %1096 = vmatprep.subr.bf16.mxu0 %v1209_v8 }
 0x165   : > { %1087 = vmatmul.mubr.msk.bf16.vlgmr.msra.gmra.mrb[0].mxu0 %vm606_vm4, %v598_v23 }
 0x166   : > { %1100 = vmatprep.mubr.msk.bf16.mxu0 %vm1210_vm2, %v1209_v8  ;;  %1097 = vmatpush3.bf16.msra.mxu0 %v1157_v51 }
 0x167   : > { %1098 = vmatprep.subr.bf16.mxu0 %v1209_v8 }
 0x16a   : > { %1099 = vmatpush3.bf16.msra.mxu0 %v1158_v52 }
 0x238   : > { %v648_v25 = vpop.f32.mrb[0].mxu0 }
 0x239   : > { %v649_v26 = vadd.f32 %v648_v25, %v604_v24  ;;  %v1088_v27 = vpop.f32.mrb[1].mxu0 }
 0x23a   : > { %v651_v28 = vpop.f32.mrb[2].mxu0 }
 0x23b   : > { %v655_v29 = vmul.f32 0.70710677, %v649_v26  ;;  %v1089_v30 = vpop.f32.mrb[3].mxu0  ;;  %v654_v32 = vmul.f32 0.5, %v649_v26 }
 0x23d   : > { %1163 = verf.f32 %v655_v29 }
 0x247   : > { %v1164_v31 = vpop.eup %1163 }
 0x248   : > { %v657_v33 = vadd.f32 1.0, %v1164_v31 }
 0x24a   : > { %v658_v34 = vmul.f32 %v657_v33, %v654_v32 }
 0x24c   : > { %v660_v35 = vpack.c.bf16 %v658_v34, %v658_v34 }
 0x24e   : > { %v671_v36 = vsel %vm610_vm3, %v660_v35, 0 }
 0x24f   : > { %1091 = vmatpush3.bf16.msra.mxu1 %v671_v36 }
 0x250   : > { %1104 = vmatprep.subr.bf16.mxu1 %v1209_v8 }
 0x252   : > { %1093 = vmatmul.mubr.msk.bf16.vlgmr.msra.gmra.mrb[0].mxu1 %vm606_vm4, %v659_v37 }
 0x253   : > { %1108 = vmatprep.mubr.msk.bf16.mxu1 %vm1210_vm2, %v1209_v8  ;;  %1105 = vmatpush3.bf16.msra.mxu1 %v1159_v61 }
 0x254   : > { %1106 = vmatprep.subr.bf16.mxu1 %v1209_v8 }
 0x257   : > { %1107 = vmatpush3.bf16.msra.mxu1 %v1160_v62 }
 0x325   : > { %v707_v39 = vpop.f32.mrb[0].mxu1 }
 0x326   : > { %v708_v40 = vadd.f32 %v707_v39, %v665_v38  ;;  %v1094_v41 = vpop.f32.mrb[1].mxu1 }
 0x327   : > { %v710_v42 = vpop.f32.mrb[2].mxu1 }
 0x328   : > { %v713_v43 = vadd.f32 %v708_v40, %v1368_v1  ;;  %v1095_v44 = vpop.f32.mrb[3].mxu1 }
 0x32a   : > { %v714_v45 = vsel %vm569_vm1, %v713_v43, 0.0 }
 0x32b   : > { %715 = vadd.xlane.f32.xlu0 %v714_v45 }
 0x3b8   : > { %v716_v46 = vpop.xlane.xlu0 %715 }
 0x3b9   : > { %v717_v47 = vmul.f32 0.03125, %v716_v46 }
 0x3bb   : > { %v718_v48 = vsub.f32 %v713_v43, %v717_v47 }
 0x3bd   : > { %v719_v49 = vmul.f32 %v718_v48, %v718_v48 }
 0x3bf   : > { %v720_v50 = vsel %vm569_vm1, %v719_v49, 0.0 }
 0x3c0   : > { %721 = vadd.xlane.f32.xlu1 %v720_v50 }
 0x44d   : > { %v722_v53 = vpop.xlane.xlu1 %721 }
 0x44e   : > { %v723_v54 = vmul.f32 0.03125, %v722_v53 }
 0x450   : > { %v724_v55 = vadd.f32 1e-05, %v723_v54 }
 0x452   : > { %1165 = vrsqrt.f32 %v724_v55 }
 0x45c   : > { %v1166_v56 = vpop.eup %1165 }
 0x45d   : > { %v726_v57 = vmul.f32 %v1166_v56, %v718_v48 }
 0x45f   : > { %v727_v58 = vmul.f32 %v1058_v16, %v726_v57 }
 0x461   : > { %v728_v59 = vadd.f32 %v1059_v18, %v727_v58 }
 0x463   : > { %v729_v60 = vpack.c.bf16 %v728_v59, %v728_v59 }
 0x465   : > { %1101 = vmatmul.mubr.msk.bf16.vlgmr.msra.gmra.mrb[4].mxu0 %vm569_vm1, %v729_v60 }
 0x538   : > { %v790_v0 = vpop.f32.mrb[4].mxu0 }
 0x539   : > { %v791_v1 = vadd.f32 %v1062_v63, %v790_v0  ;;  %v1102_v2 = vpop.f32.mrb[5].mxu0 }
 0x53a   : > { %v793_v3 = vpop.f32.mrb[6].mxu0 }
 0x53b   : > { %v797_v4 = vmul.f32 0.70710677, %v791_v1  ;;  %v1103_v5 = vpop.f32.mrb[7].mxu0  ;;  %v796_v7 = vmul.f32 0.5, %v791_v1 }
 0x53d   : > { %1167 = verf.f32 %v797_v4 }
 0x547   : > { %v1168_v6 = vpop.eup %1167 }
 0x548   : > { %v799_v9 = vadd.f32 1.0, %v1168_v6 }
 0x54a   : > { %v800_v8 = vmul.f32 %v799_v9, %v796_v7 }
 0x54c   : > { %v801_v10 = vpack.c.bf16 %v800_v8, %v800_v8 }
 0x54e   : > { %1109 = vmatmul.mubr.msk.bf16.vlgmr.msra.gmra.mrb[4].mxu1 %vm569_vm1, %v801_v10 }
 0x621   : > { %v862_v12 = vpop.f32.mrb[4].mxu1 }
 0x622   : > { %v863_v13 = vadd.f32 %v1066_v11, %v862_v12  ;;  %v1110_v14 = vpop.f32.mrb[5].mxu1 }
 0x623   : > { %v865_v15 = vpop.f32.mrb[6].mxu1 }
 0x624   : > { %v868_v16 = vadd.f32 %v863_v13, %v713_v43  ;;  %v1111_v17 = vpop.f32.mrb[7].mxu1 }
 0x626   : > { %869 = vst.msk [vmem:[%s1363_s5] sm:$0xff] %vm569_vm1, %v868_v16 }
 0x627 PF: > { %s1475_s14 = sld [smem:[#allocation4_spill]]  ;;  %s1476_s17 = sld [smem:[#allocation2_spill]] }
 0x628   : > { %s1477_s18 = sld [smem:[#allocation3_spill]]  ;;  %s1478_s19 = sld [smem:[#allocation5_spill]] }
 0x629   : > { %s1479_s20 = sld [smem:[#allocation6_spill]] }
 0x62d   : > { %s21_s21 = sadd.s32 1, %s1475_s14  }
 0x62e   : > { %p18_p8 = scmp.ge.s32.totalorder %s21_s21, 6  }
 0x630   :  { %20 = sbr.rel (!%p18_p8) target bundleno = 6 (0x6), region = 128 }

</bundles_post_ra>
